<compile_context>
chip_gen: v7x
topology: tpu7x:2x2x1
jax: 0.10.0
libtpu: 0.0.40
codegen_flags: <defaults>
</compile_context>

<pallas_src>
import functools

import jax
import jax.numpy as jnp
from jax.experimental import pallas as pl
from jax.experimental.pallas import tpu as pltpu


def _val2fig_kernel(x_ref, o_ref, *, expected_range, floor):
    # x_ref / o_ref: (P, H*W) block -- P whole planes, each flattened into lanes.
    x = x_ref[...].astype(jnp.float32)
    row_min = jnp.min(x, axis=-1, keepdims=True)   # per-plane min
    row_max = jnp.max(x, axis=-1, keepdims=True)   # per-plane max
    # One exact divide per plane (negligible), 2 VALU ops per element after.
    # Note: a constant plane (max == min) yields Inf/NaN, matching PyTorch.
    scale = expected_range / (row_max - row_min)
    bias = floor - row_min * scale
    o_ref[...] = (x * scale + bias).astype(o_ref.dtype)


def val2fig(x, img_mode="L", *, target_block_bytes=2 * 1024 * 1024):
    """Val2Fig forward. x: (N, C, H, W) float array. Returns same shape/dtype."""
    supported = ("RGB", "L", "1")
    assert img_mode in supported, f"unsupported img_mode {img_mode}"

    if img_mode in ("L", "RGB"):
        expected_range, floor = 255.0, 0.0
    else:  # '1'
        expected_range, floor = 1.0, 0.0

    B, C, H, W = x.shape
    R = B * C            # number of independent planes
    L = H * W            # flattened plane length (lane-dense last dim)
    itemsize = jnp.dtype(x.dtype).itemsize

    # Rows (planes) per block: multiple of 8 (sublane tiling), sized so one
    # block is ~target_block_bytes (safe vs. v7x's smaller VMEM budget when
    # double-buffered: ~4 * 2 MiB = 8 MiB << default scoped limit).
    P = max(8, (target_block_bytes // (L * itemsize)) // 8 * 8)
    R8 = pl.cdiv(R, 8) * 8
    P = min(P, R8)
    # Keep at least 2 grid steps when there is enough work, so the "parallel"
    # axis can be sharded across both TensorCores on v7x.
    if R8 >= 16:
        P = max(8, min(P, (R8 // 2) // 8 * 8))
    Rp = pl.cdiv(R, P) * P
    # TODO(synk): planes so large that a single P=8 block overflows VMEM
    # (e.g. 2048x2048 f32) need a two-pass reduce-then-apply split along H.

    xr = x.reshape(R, L)
    if Rp != R:
        # Padded rows produce NaN (0/0) but are sliced off below.
        xr = jnp.pad(xr, ((0, Rp - R), (0, 0)))

    kernel = functools.partial(
        _val2fig_kernel, expected_range=expected_range, floor=floor
    )

    out = pl.pallas_call(
        kernel,
        out_shape=jax.ShapeDtypeStruct((Rp, L), x.dtype),
        grid_spec=pl.GridSpec(
            grid=(Rp // P,),
            in_specs=[pl.BlockSpec((P, L), lambda i: (i, 0))],
            out_specs=pl.BlockSpec((P, L), lambda i: (i, 0)),
        ),
        compiler_params=pltpu.CompilerParams(
            dimension_semantics=("parallel",),
        ),
        cost_estimate=pl.CostEstimate(
            flops=4 * R * L,
            transcendentals=0,
            bytes_accessed=2 * R * L * itemsize,
        ),
    )(xr)

    if Rp != R:
        out = out[:R]
    return out.reshape(B, C, H, W)


def _reference(x, img_mode="L"):
    # Pure-JAX reference mirroring the PyTorch forward.
    x_min = jnp.min(jnp.min(x, axis=-1, keepdims=True), axis=-2, keepdims=True)
    x_max = jnp.max(jnp.max(x, axis=-1, keepdims=True), axis=-2, keepdims=True)
    x_range = x_max - x_min
    if img_mode in ("L", "RGB"):
        expected_range, floor = 255.0, 0.0
    else:
        expected_range, floor = 1.0, 0.0
    return (x - x_min) / x_range * expected_range + floor


if __name__ == "__main__":
    key = jax.random.PRNGKey(0)
    x = jax.random.normal(key, (2, 4, 16, 16), dtype=jnp.float32)

    out_L = val2fig(x, img_mode="L")
    jax.block_until_ready(out_L)
    out_bin = val2fig(x, img_mode="1")
    jax.block_until_ready(out_bin)

    ref_L = _reference(x, "L")
    ref_bin = _reference(x, "1")
    assert jnp.allclose(out_L, ref_L, rtol=1e-5, atol=1e-4), "mismatch (L)"
    assert jnp.allclose(out_bin, ref_bin, rtol=1e-5, atol=1e-6), "mismatch (1)"

    print("KERNEL_OK")
</pallas_src>

<mosaic_0001>
module attributes {stable_mosaic.version = 11 : i64} {
  func.func @_val2fig_kernel(%arg0: i32, %arg1: memref<8x256xf32, #tpu.memory_space<vmem>>, %arg2: memref<8x256xf32, #tpu.memory_space<vmem>>) attributes {dimension_semantics = [#tpu.dimension_semantics<parallel>], iteration_bounds = array<i64: 1>, scalar_prefetch = 0 : i64, scratch_operands = 0 : i64, tpu.core_type = #tpu.core_type<tc>, window_params = [{transform_indices = @transform_0, window_bounds = array<i64: 8, 256>}, {transform_indices = @transform_1, window_bounds = array<i64: 8, 256>}]} {
    %c0 = arith.constant 0 : index
    %c0_0 = arith.constant 0 : index
    %0 = vector.load %arg1[%c0, %c0_0] : memref<8x256xf32, #tpu.memory_space<vmem>>, vector<8x256xf32>
    %cst = arith.constant dense<0x7F800000> : vector<8xf32>
    %1 = vector.multi_reduction <minimumf>, %0, %cst [1] : vector<8x256xf32> to vector<8xf32>
    %2 = vector.shape_cast %1 : vector<8xf32> to vector<8x1xf32>
    %cst_1 = arith.constant dense<0xFF800000> : vector<8xf32>
    %3 = vector.multi_reduction <maximumf>, %0, %cst_1 [1] : vector<8x256xf32> to vector<8xf32>
    %4 = vector.shape_cast %3 : vector<8xf32> to vector<8x1xf32>
    %5 = arith.subf %4, %2 : vector<8x1xf32>
    %cst_2 = arith.constant 2.550000e+02 : f32
    %6 = vector.broadcast %cst_2 : f32 to vector<8x1xf32>
    %7 = arith.divf %6, %5 : vector<8x1xf32>
    %8 = arith.mulf %2, %7 : vector<8x1xf32>
    %cst_3 = arith.constant 0.000000e+00 : f32
    %9 = vector.broadcast %cst_3 : f32 to vector<8x1xf32>
    %10 = arith.subf %9, %8 : vector<8x1xf32>
    %11 = vector.broadcast %7 : vector<8x1xf32> to vector<8x256xf32>
    %12 = arith.mulf %0, %11 : vector<8x256xf32>
    %13 = vector.broadcast %10 : vector<8x1xf32> to vector<8x256xf32>
    %14 = arith.addf %12, %13 : vector<8x256xf32>
    %c0_4 = arith.constant 0 : index
    %c0_5 = arith.constant 0 : index
    %15 = vector.load %arg2[%c0_4, %c0_5] : memref<8x256xf32, #tpu.memory_space<vmem>>, vector<8x256xf32>
    tpu.vector_store %arg2[%c0_4, %c0_5], %14 {strides = array<i32>} : memref<8x256xf32, #tpu.memory_space<vmem>>, vector<8x256xf32>,
    return
  }
  func.func @transform_0(%arg0: i32) -> (i32, i32) {
    %c0_i32 = arith.constant 0 : i32
    %c0_i32_0 = arith.constant 0 : i32
    return %arg0, %c0_i32 : i32, i32
  }
  func.func @transform_1(%arg0: i32) -> (i32, i32) {
    %c0_i32 = arith.constant 0 : i32
    %c0_i32_0 = arith.constant 0 : i32
    return %arg0, %c0_i32 : i32, i32
  }
}

</mosaic_0001>

<bundles_post_ra>
// kernel: tpu_custom_call.1
= control target key start
LH: loop header
LB: loop body
LE: loop exit
PB: predicated region body
PF: predicated region fallthrough
CT: control target
= control target key end

     0   :  { %6 = vsyncpa [#allocation3], 0  ;;  %s143_s0 = inlined_call_operand.hbm [shape: f32[8,256], index: 0, kind: input, shape index: {}]   ;;  %s144_s1 = inlined_call_operand.hbm [shape: f32[8,256], index: 1, kind: output, shape index: {}]  }
   0x1   :  { %7 = vsyncpa [#allocation4], 0  ;;  %s107_s6 = smov [#allocation2]   ;;  %s59_s10 = scalar_lea.hbm %s143_s0, 256 }
   0x2   :  { %s14_s7 = sshll.u32 %s107_s6, 4  ;;  %p60_p0 = scmp.ne.s32.totalorder %s143_s0, %s59_s10  ;;  %s15_s7 = int_to_ptr.vmem [resolvable:$true] %s14_s7 }
   0x3   :  { %p63_p1 = scmp.lt.u32.totalorder %s59_s10, %s143_s0 }
   0x5   :  { %p65_p2 = pnand %p63_p1, %p60_p0 }
   0x7   :  { %68 = shalt.err (!%p65_p2)
}
   0x8   :  { %s69_s15 = scalar_lea.vmem %s15_s7, 256  ;;  %p74_p4 = scmp.lt.s32.totalorder %s15_s7, %s15_s7 }
   0x9   :  { %p70_p3 = scmp.ne.s32.totalorder %s15_s7, %s69_s15  ;;  %p75_p5 = scmp.lt.s32.totalorder %s69_s15, %s69_s15 }
   0xb   :  { %p76_p6 = por %p75_p5, %p74_p4 }
   0xd   :  { %p77_p7 = pnand %p76_p6, %p70_p3 }
   0xf   :  { %80 = shalt.err (!%p77_p7)
}
  0x10   :  { %17 = dma.hbm_to_vmem [thread:$0]  %s143_s0, 256, %s15_s7, [#allocation3]  }
  0x11   :  { %103 = dma.done.wait [#allocation3], 256  }
  0x12   :  { %104 = vsyncadd [#allocation3], 4294967040  ;;  %v21_v0 = vld [vmem:[#allocation2] sm:$0xff]  ;;  %v22_v1 = vld [vmem:[#allocation2 + $0x8] sm:$0xff]  ;;  %s108_s18 = smov [#allocation5]  }
  0x13   :  { %v23_v2 = vmin.f32 %v21_v0, %v22_v1  ;;  %v26_v3 = vmax.f32 %v21_v0, %v22_v1  ;;  %s46_s19 = sshll.u32 %s108_s18, 4  ;;  %s47_s19 = int_to_ptr.vmem [resolvable:$true] %s46_s19 }
  0x14   :  { %s81_s0 = scalar_lea.vmem %s47_s19, 256  ;;  %p86_p9 = scmp.lt.s32.totalorder %s47_s19, %s47_s19 }
  0x15   :  { %24 = vmin.xlane.f32.xlu0 %v23_v2  ;;  %p82_p8 = scmp.ne.s32.totalorder %s47_s19, %s81_s0  ;;  %p87_p10 = scmp.lt.s32.totalorder %s81_s0, %s81_s0 }
  0x17   :  { %p88_p11 = por %p87_p10, %p86_p9 }
  0x19   :  { %27 = vmax.xlane.f32.xlu0 %v26_v3  ;;  %p89_p12 = pnand %p88_p11, %p82_p8 }
  0xa2   :  { %v25_v4 = vpop.xlane.xlu0 %24 }
  0xa6   :  { %v28_v5 = vpop.xlane.xlu0 %27 }
  0xa7   :  { %v29_v6 = vsub.f32 %v28_v5, %v25_v4 }
  0xa9   :  { %57 = vrcp.f32 %v29_v6 }
  0xb3   :  { %v58_v7 = vpop.eup %57 }
  0xb4   :  { %v31_v8 = vmul.f32 255.0, %v58_v7 }
  0xb6   :  { %v32_v9 = vmul.f32 %v31_v8, %v25_v4  ;;  %v34_v11 = vmul.f32 %v31_v8, %v21_v0  ;;  %v35_v12 = vmul.f32 %v31_v8, %v22_v1 }
  0xb8   :  { %v33_v10 = vsub.f32 0.0, %v32_v9 }
  0xba   :  { %v36_v13 = vadd.f32 %v34_v11, %v33_v10  ;;  %v37_v14 = vadd.f32 %v35_v12, %v33_v10 }
  0xbc   :  { %38 = vst [vmem:[#allocation5] sm:$0xff] %v36_v13  ;;  %39 = vst [vmem:[#allocation5 + $0x8] sm:$0xff] %v37_v14 }
  0xbd   :  { %92 = shalt.err (!%p89_p12)
}
  0xbe   :  { %s93_s22 = scalar_lea.hbm %s144_s1, 256 }
  0xbf   :  { %p94_p13 = scmp.ne.s32.totalorder %s144_s1, %s93_s22  ;;  %p97_p0 = scmp.lt.u32.totalorder %s93_s22, %s144_s1 }
  0xc1   :  { %p99_p1 = pnand %p97_p0, %p94_p13 }
  0xc3   :  { %102 = shalt.err (!%p99_p1)
}
  0xc4   :  { %49 = dma.vmem_to_hbm [thread:$0]  %s47_s19, 256, %s144_s1, [#allocation4]  }
  0xc5   :  { %105 = dma.done.wait [#allocation4], 256  }
  0xc6   :  { %106 = vsyncadd [#allocation4], 4294967040 }
  0xc7   :  { %53 = vsyncpa [#allocation3], 1 }
  0xc8   :  { %54 = vsyncpa [#allocation4], 1 }

</bundles_post_ra>
